<compile_context>
chip_gen: v6e
topology: v6e:2x2x1
jax: 0.10.0
libtpu: 0.0.40
codegen_flags: <defaults>
</compile_context>

<pallas_src>
import jax
import jax.numpy as jnp
from jax.experimental import pallas as pl
from jax.experimental.pallas import tpu as pltpu

LANE = 128        # TPU lane width (last-dim alignment)
SUBLANE_F32 = 8   # f32 sublane packing (second-to-last-dim alignment)


def _round_up(n, m):
    return ((n + m - 1) // m) * m


# ----------------------------------------------------------------------------
# Kernel
# ----------------------------------------------------------------------------
def dense_kernel(x_ref, w1_ref, s1_ref, t1_ref, w2_ref, s2_ref, t2_ref,
                 w3_ref, b3_ref, out_ref):
    # fc1 (bf16 MXU, f32 acc) + folded eval-BN1 (f32 scale/shift) + ReLU.
    # Dropout = identity in eval mode.
    x = x_ref[...].astype(jnp.bfloat16)          # in-kernel cast (no wrapper pass)
    h = jnp.dot(x, w1_ref[...], preferred_element_type=jnp.float32)
    h = jnp.maximum(h * s1_ref[...] + t1_ref[...], 0.0)

    # fc2 + folded eval-BN2 + ReLU
    h = jnp.dot(h.astype(jnp.bfloat16), w2_ref[...],
                preferred_element_type=jnp.float32)
    h = jnp.maximum(h * s2_ref[...] + t2_ref[...], 0.0)

    # fc3 (output features zero-padded to a lane-dense multiple of 128)
    o = jnp.dot(h.astype(jnp.bfloat16), w3_ref[...],
                preferred_element_type=jnp.float32)
    out_ref[...] = (o + b3_ref[...]).astype(out_ref.dtype)


# ----------------------------------------------------------------------------
# Wrapper
# ----------------------------------------------------------------------------
def dense_forward(x_nchw, folded_params, out_channels, *, tb=512):
    """x_nchw: (B, C, H, W) float32. Returns (B, out_channels) float32."""
    w1, s1, t1, w2, s2, t2, w3, b3 = folded_params
    B = x_nchw.shape[0]
    D = w1.shape[0]
    H = w1.shape[1]        # hidden width (128)
    N_pad = w3.shape[1]    # lane-padded output features

    # nn.Flatten() on NCHW (row-major) — contiguous reshape, no data movement.
    # Stays f32; the bf16 cast happens inside the kernel.
    x = x_nchw.reshape(B, -1)
    assert x.shape[1] == D

    # Batch tile: large enough to amortize per-grid-step overhead, multiple of
    # 8 (f32 sublane). For small B shrink so there are >=2 grid steps when
    # possible (keeps both v7x TensorCores busy). Ragged last tile is handled
    # by Pallas — no jnp.pad pass over x.
    TB = min(tb, _round_up(max(pl.cdiv(B, 2), SUBLANE_F32), SUBLANE_F32))
    grid = (pl.cdiv(B, TB),)

    # VMEM budget (double-buffered x/out + weights + intermediate headroom),
    # clamped to stay safe on v7x's 64 MiB physical / 32 MiB default scoped.
    weights_bytes = 2 * 2 * (D * H + H * H + H * N_pad)       # bf16, 2 buffers
    io_bytes = 2 * TB * D * 4 + 2 * TB * N_pad * 4            # f32, 2 buffers
    interm_bytes = TB * (4 * H + 2 * N_pad) * 4               # headroom
    vmem_limit = min(max(2 * (weights_bytes + io_bytes + interm_bytes),
                         32 << 20), 48 << 20)

    resident = lambda shape: pl.BlockSpec(shape, lambda i: (0, 0))

    out_padded = pl.pallas_call(
        dense_kernel,
        out_shape=jax.ShapeDtypeStruct((B, N_pad), jnp.float32),
        grid=grid,
        in_specs=[
            pl.BlockSpec((TB, D), lambda i: (i, 0)),       # x: tiled over batch
            resident((D, H)),                              # fc1 weight (bf16)
            resident((1, H)), resident((1, H)),            # BN1 scale / shift (f32)
            resident((H, H)),                              # fc2 weight (bf16)
            resident((1, H)), resident((1, H)),            # BN2 scale / shift (f32)
            resident((H, N_pad)), resident((1, N_pad)),    # fc3 weight / bias
        ],
        out_specs=pl.BlockSpec((TB, N_pad), lambda i: (i, 0)),
        compiler_params=pltpu.CompilerParams(
            dimension_semantics=("parallel",),
            vmem_limit_bytes=int(vmem_limit)),
    )(x, w1, s1, t1, w2, s2, t2, w3, b3)

    return out_padded[:, :out_channels]


# ----------------------------------------------------------------------------
# Parameters (synthetic, deterministic) and folding
# ----------------------------------------------------------------------------
def make_raw_params(key, in_features, out_channels):
    """Raw parameters mimicking the PyTorch module (weights stored (in, out))."""
    ks = jax.random.split(key, 14)

    def linear(kw, kb, fan_in, fan_out):
        bound = 1.0 / jnp.sqrt(fan_in)
        w = jax.random.uniform(kw, (fan_in, fan_out), jnp.float32, -bound, bound)
        b = jax.random.uniform(kb, (1, fan_out), jnp.float32, -bound, bound)
        return w, b

    def bn(kg, kb, km, kv, feat):
        gamma = 1.0 + 0.1 * jax.random.normal(kg, (1, feat), jnp.float32)
        beta = 0.1 * jax.random.normal(kb, (1, feat), jnp.float32)
        rmean = 0.1 * jax.random.normal(km, (1, feat), jnp.float32)
        rvar = 1.0 + 0.1 * jax.random.uniform(kv, (1, feat), jnp.float32)
        return gamma, beta, rmean, rvar

    w1, b1 = linear(ks[0], ks[1], in_features, 128)
    bn1 = bn(ks[2], ks[3], ks[4], ks[5], 128)
    w2, b2 = linear(ks[6], ks[7], 128, 128)
    bn2 = bn(ks[8], ks[9], ks[10], ks[11], 128)
    w3, b3 = linear(ks[12], ks[13], 128, out_channels)
    return dict(w1=w1, b1=b1, bn1=bn1, w2=w2, b2=b2, bn2=bn2, w3=w3, b3=b3)


def fold_params(raw, eps=1e-5):
    """Fold eval-mode BN into f32 per-column scale/shift (applied in-kernel on
    the f32 accumulator, avoiding compounded bf16 quantization of the weights);
    cast weights bf16; lane-pad fc3 output features to a multiple of 128."""
    def fold_bn(b, bn_p):
        gamma, beta, rmean, rvar = bn_p
        scale = gamma / jnp.sqrt(rvar + eps)            # (1, out)
        shift = (b - rmean) * scale + beta              # (1, out)
        return scale.astype(jnp.float32), shift.astype(jnp.float32)

    s1, t1 = fold_bn(raw["b1"], raw["bn1"])
    s2, t2 = fold_bn(raw["b2"], raw["bn2"])
    w1 = raw["w1"].astype(jnp.bfloat16)
    w2 = raw["w2"].astype(jnp.bfloat16)

    w3, b3 = raw["w3"], raw["b3"]
    out_ch = w3.shape[1]
    n_pad = _round_up(out_ch, LANE)
    if n_pad != out_ch:
        w3 = jnp.pad(w3, ((0, 0), (0, n_pad - out_ch)))
        b3 = jnp.pad(b3, ((0, 0), (0, n_pad - out_ch)))
    return (w1, s1, t1, w2, s2, t2,
            w3.astype(jnp.bfloat16), b3.astype(jnp.float32)), out_ch


# ----------------------------------------------------------------------------
# Pure-JAX reference (PyTorch eval-mode semantics, f32)
# ----------------------------------------------------------------------------
def reference_forward(x_nchw, raw, eps=1e-5):
    x = x_nchw.reshape(x_nchw.shape[0], -1)

    def bn_apply(z, bn_p):
        gamma, beta, rmean, rvar = bn_p
        return gamma * (z - rmean) / jnp.sqrt(rvar + eps) + beta

    h = jnp.maximum(bn_apply(x @ raw["w1"] + raw["b1"], raw["bn1"]), 0.0)
    h = jnp.maximum(bn_apply(h @ raw["w2"] + raw["b2"], raw["bn2"]), 0.0)
    return h @ raw["w3"] + raw["b3"]


if __name__ == "__main__":
    key = jax.random.PRNGKey(0)
    k_x, k_p = jax.random.split(key)

    B, C, H, W = 8, 4, 16, 16           # flattened in_features = 1024
    out_channels = 10
    x = jax.random.normal(k_x, (B, C, H, W), jnp.float32)

    raw = make_raw_params(k_p, C * H * W, out_channels)
    folded, out_ch = fold_params(raw)

    out = dense_forward(x, folded, out_ch)
    out = jax.block_until_ready(out)

    ref = reference_forward(x, raw)
    assert out.shape == (B, out_channels)
    # bf16 weights/activations vs f32 reference -> loose tolerance
    assert jnp.allclose(out, ref, atol=1e-2, rtol=1e-2), (
        float(jnp.max(jnp.abs(out - ref))))

    print("KERNEL_OK")
</pallas_src>

<mosaic_0001>
module attributes {stable_mosaic.version = 11 : i64} {
  func.func @dense_kernel(%arg0: i32, %arg1: memref<8x1024xf32, #tpu.memory_space<vmem>>, %arg2: memref<1024x128xbf16, #tpu.memory_space<vmem>>, %arg3: memref<1x128xf32, #tpu.memory_space<vmem>>, %arg4: memref<1x128xf32, #tpu.memory_space<vmem>>, %arg5: memref<128x128xbf16, #tpu.memory_space<vmem>>, %arg6: memref<1x128xf32, #tpu.memory_space<vmem>>, %arg7: memref<1x128xf32, #tpu.memory_space<vmem>>, %arg8: memref<128x128xbf16, #tpu.memory_space<vmem>>, %arg9: memref<1x128xf32, #tpu.memory_space<vmem>>, %arg10: memref<8x128xf32, #tpu.memory_space<vmem>>) attributes {dimension_semantics = [#tpu.dimension_semantics<parallel>], iteration_bounds = array<i64: 1>, scalar_prefetch = 0 : i64, scratch_operands = 0 : i64, tpu.core_type = #tpu.core_type<tc>, window_params = [{transform_indices = @transform_0, window_bounds = array<i64: 8, 1024>}, {pipeline_mode = #tpu.pipeline_mode<synchronous>, transform_indices = @transform_1, window_bounds = array<i64: 1024, 128>}, {pipeline_mode = #tpu.pipeline_mode<synchronous>, transform_indices = @transform_2, window_bounds = array<i64: 1, 128>}, {pipeline_mode = #tpu.pipeline_mode<synchronous>, transform_indices = @transform_3, window_bounds = array<i64: 1, 128>}, {pipeline_mode = #tpu.pipeline_mode<synchronous>, transform_indices = @transform_4, window_bounds = array<i64: 128, 128>}, {pipeline_mode = #tpu.pipeline_mode<synchronous>, transform_indices = @transform_5, window_bounds = array<i64: 1, 128>}, {pipeline_mode = #tpu.pipeline_mode<synchronous>, transform_indices = @transform_6, window_bounds = array<i64: 1, 128>}, {pipeline_mode = #tpu.pipeline_mode<synchronous>, transform_indices = @transform_7, window_bounds = array<i64: 128, 128>}, {pipeline_mode = #tpu.pipeline_mode<synchronous>, transform_indices = @transform_8, window_bounds = array<i64: 1, 128>}, {transform_indices = @transform_9, window_bounds = array<i64: 8, 128>}]} {
    %c0 = arith.constant 0 : index
    %c0_0 = arith.constant 0 : index
    %0 = vector.load %arg1[%c0, %c0_0] : memref<8x1024xf32, #tpu.memory_space<vmem>>, vector<8x1024xf32>
    %1 = arith.truncf %0 : vector<8x1024xf32> to vector<8x1024xbf16>
    %c0_1 = arith.constant 0 : index
    %c0_2 = arith.constant 0 : index
    %2 = vector.load %arg2[%c0_1, %c0_2] : memref<1024x128xbf16, #tpu.memory_space<vmem>>, vector<1024x128xbf16>
    %cst = arith.constant dense<0.000000e+00> : vector<8x128xf32>
    %3 = tpu.matmul %1, %2, %cst {dimension_numbers = #tpu.dot_dimension_numbers<[1], [0], [0], [1], [0, 0, 1, 1], [], []>} : vector<8x1024xbf16>, vector<1024x128xbf16>, vector<8x128xf32> -> vector<8x128xf32>
    %c0_3 = arith.constant 0 : index
    %c0_4 = arith.constant 0 : index
    %4 = vector.load %arg3[%c0_3, %c0_4] : memref<1x128xf32, #tpu.memory_space<vmem>>, vector<1x128xf32>
    %5 = vector.broadcast %4 : vector<1x128xf32> to vector<8x128xf32>
    %6 = arith.mulf %3, %5 : vector<8x128xf32>
    %c0_5 = arith.constant 0 : index
    %c0_6 = arith.constant 0 : index
    %7 = vector.load %arg4[%c0_5, %c0_6] : memref<1x128xf32, #tpu.memory_space<vmem>>, vector<1x128xf32>
    %8 = vector.broadcast %7 : vector<1x128xf32> to vector<8x128xf32>
    %9 = arith.addf %6, %8 : vector<8x128xf32>
    %cst_7 = arith.constant 0.000000e+00 : f32
    %10 = vector.broadcast %cst_7 : f32 to vector<8x128xf32>
    %11 = arith.maximumf %9, %10 : vector<8x128xf32>
    %12 = arith.truncf %11 : vector<8x128xf32> to vector<8x128xbf16>
    %c0_8 = arith.constant 0 : index
    %c0_9 = arith.constant 0 : index
    %13 = vector.load %arg5[%c0_8, %c0_9] : memref<128x128xbf16, #tpu.memory_space<vmem>>, vector<128x128xbf16>
    %cst_10 = arith.constant dense<0.000000e+00> : vector<8x128xf32>
    %14 = tpu.matmul %12, %13, %cst_10 {dimension_numbers = #tpu.dot_dimension_numbers<[1], [0], [0], [1], [0, 0, 1, 1], [], []>} : vector<8x128xbf16>, vector<128x128xbf16>, vector<8x128xf32> -> vector<8x128xf32>
    %c0_11 = arith.constant 0 : index
    %c0_12 = arith.constant 0 : index
    %15 = vector.load %arg6[%c0_11, %c0_12] : memref<1x128xf32, #tpu.memory_space<vmem>>, vector<1x128xf32>
    %16 = vector.broadcast %15 : vector<1x128xf32> to vector<8x128xf32>
    %17 = arith.mulf %14, %16 : vector<8x128xf32>
    %c0_13 = arith.constant 0 : index
    %c0_14 = arith.constant 0 : index
    %18 = vector.load %arg7[%c0_13, %c0_14] : memref<1x128xf32, #tpu.memory_space<vmem>>, vector<1x128xf32>
    %19 = vector.broadcast %18 : vector<1x128xf32> to vector<8x128xf32>
    %20 = arith.addf %17, %19 : vector<8x128xf32>
    %cst_15 = arith.constant 0.000000e+00 : f32
    %21 = vector.broadcast %cst_15 : f32 to vector<8x128xf32>
    %22 = arith.maximumf %20, %21 : vector<8x128xf32>
    %23 = arith.truncf %22 : vector<8x128xf32> to vector<8x128xbf16>
    %c0_16 = arith.constant 0 : index
    %c0_17 = arith.constant 0 : index
    %24 = vector.load %arg8[%c0_16, %c0_17] : memref<128x128xbf16, #tpu.memory_space<vmem>>, vector<128x128xbf16>
    %cst_18 = arith.constant dense<0.000000e+00> : vector<8x128xf32>
    %25 = tpu.matmul %23, %24, %cst_18 {dimension_numbers = #tpu.dot_dimension_numbers<[1], [0], [0], [1], [0, 0, 1, 1], [], []>} : vector<8x128xbf16>, vector<128x128xbf16>, vector<8x128xf32> -> vector<8x128xf32>
    %c0_19 = arith.constant 0 : index
    %c0_20 = arith.constant 0 : index
    %26 = vector.load %arg9[%c0_19, %c0_20] : memref<1x128xf32, #tpu.memory_space<vmem>>, vector<1x128xf32>
    %27 = vector.broadcast %26 : vector<1x128xf32> to vector<8x128xf32>
    %28 = arith.addf %25, %27 : vector<8x128xf32>
    %c0_21 = arith.constant 0 : index
    %c0_22 = arith.constant 0 : index
    %29 = vector.load %arg10[%c0_21, %c0_22] : memref<8x128xf32, #tpu.memory_space<vmem>>, vector<8x128xf32>
    tpu.vector_store %arg10[%c0_21, %c0_22], %28 {strides = array<i32>} : memref<8x128xf32, #tpu.memory_space<vmem>>, vector<8x128xf32>,
    return
  }
  func.func @transform_0(%arg0: i32) -> (i32, i32) {
    %c0_i32 = arith.constant 0 : i32
    %c0_i32_0 = arith.constant 0 : i32
    return %arg0, %c0_i32 : i32, i32
  }
  func.func @transform_1(%arg0: i32) -> (i32, i32) {
    %c0_i32 = arith.constant 0 : i32
    %c0_i32_0 = arith.constant 0 : i32
    %c0_i32_1 = arith.constant 0 : i32
    return %c0_i32, %c0_i32_0 : i32, i32
  }
  func.func @transform_2(%arg0: i32) -> (i32, i32) {
    %c0_i32 = arith.constant 0 : i32
    %c0_i32_0 = arith.constant 0 : i32
    %c0_i32_1 = arith.constant 0 : i32
    return %c0_i32, %c0_i32_0 : i32, i32
  }
  func.func @transform_3(%arg0: i32) -> (i32, i32) {
    %c0_i32 = arith.constant 0 : i32
    %c0_i32_0 = arith.constant 0 : i32
    %c0_i32_1 = arith.constant 0 : i32
    return %c0_i32, %c0_i32_0 : i32, i32
  }
  func.func @transform_4(%arg0: i32) -> (i32, i32) {
    %c0_i32 = arith.constant 0 : i32
    %c0_i32_0 = arith.constant 0 : i32
    %c0_i32_1 = arith.constant 0 : i32
    return %c0_i32, %c0_i32_0 : i32, i32
  }
  func.func @transform_5(%arg0: i32) -> (i32, i32) {
    %c0_i32 = arith.constant 0 : i32
    %c0_i32_0 = arith.constant 0 : i32
    %c0_i32_1 = arith.constant 0 : i32
    return %c0_i32, %c0_i32_0 : i32, i32
  }
  func.func @transform_6(%arg0: i32) -> (i32, i32) {
    %c0_i32 = arith.constant 0 : i32
    %c0_i32_0 = arith.constant 0 : i32
    %c0_i32_1 = arith.constant 0 : i32
    return %c0_i32, %c0_i32_0 : i32, i32
  }
  func.func @transform_7(%arg0: i32) -> (i32, i32) {
    %c0_i32 = arith.constant 0 : i32
    %c0_i32_0 = arith.constant 0 : i32
    %c0_i32_1 = arith.constant 0 : i32
    return %c0_i32, %c0_i32_0 : i32, i32
  }
  func.func @transform_8(%arg0: i32) -> (i32, i32) {
    %c0_i32 = arith.constant 0 : i32
    %c0_i32_0 = arith.constant 0 : i32
    %c0_i32_1 = arith.constant 0 : i32
    return %c0_i32, %c0_i32_0 : i32, i32
  }
  func.func @transform_9(%arg0: i32) -> (i32, i32) {
    %c0_i32 = arith.constant 0 : i32
    %c0_i32_0 = arith.constant 0 : i32
    return %arg0, %c0_i32 : i32, i32
  }
}

</mosaic_0001>

<bundles_post_ra>
// kernel: tpu_custom_call.1
= control target key start
LH: loop header
LB: loop body
LE: loop exit
PB: predicated region body
PF: predicated region fallthrough
CT: control target
= control target key end

     0   :  { %14 = vsyncpa [#allocation3], 0  ;;  %s1588_s0 = inlined_call_operand.hbm [shape: f32[8,1024], index: 0, kind: input, shape index: {}]   ;;  %s1589_s1 = inlined_call_operand.hbm [shape: bf16[1024,128], index: 1, kind: input, shape index: {}]   ;;  %s1590_s2 = inlined_call_operand.vmem [shape: f32[1,128], index: 2, kind: input, shape index: {}]   ;;  %s1591_s3 = inlined_call_operand.vmem [shape: f32[1,128], index: 3, kind: input, shape index: {}]   ;;  %s1592_s4 = inlined_call_operand.hbm [shape: bf16[128,128], index: 4, kind: input, shape index: {}]   ;;  %s1593_s5 = inlined_call_operand.vmem [shape: f32[1,128], index: 5, kind: input, shape index: {}]   ;;  %s1594_s6 = inlined_call_operand.vmem [shape: f32[1,128], index: 6, kind: input, shape index: {}]   ;;  %s1595_s7 = inlined_call_operand.hbm [shape: bf16[128,128], index: 7, kind: input, shape index: {}]   ;;  %s1596_s8 = inlined_call_operand.vmem [shape: f32[1,128], index: 8, kind: input, shape index: {}]   ;;  %s1597_s9 = inlined_call_operand.hbm [shape: f32[8,128], index: 9, kind: output, shape index: {}]  }
   0x1   :  { %15 = vsyncpa [#allocation6], 0 }
   0x2   :  { %16 = vsyncpa [#allocation9], 0 }
   0x3   :  { %17 = vsyncpa [#allocation4], 0  ;;  %s1472_s30 = smov [#allocation5]  }
   0x4   :  { %s33_s10 = sshll.u32 %s1472_s30, 4  ;;  %s34_s10 = int_to_ptr.vmem [resolvable:$true] %s33_s10 }
   0x5   :  { %s1372_s11 = scalar_lea.vmem %s34_s10, 8192  ;;  %p1377_p1 = scmp.lt.s32.totalorder %s34_s10, %s34_s10 }
   0x6   :  { %p1373_p0 = scmp.ne.s32.totalorder %s34_s10, %s1372_s11  ;;  %p1378_p2 = scmp.lt.s32.totalorder %s1372_s11, %s1372_s11 }
   0x8   :  { %p1379_p3 = por %p1378_p2, %p1377_p1 }
   0xa   :  { %p1380_p4 = pnand %p1379_p3, %p1373_p0 }
   0xc   :  { %1383 = shalt.err (!%p1380_p4)
}
   0xd   :  { %s1473_s12 = smov 64   ;;  %s1474_s13 = smov 4  }
   0xe   :  { %39 = dma.hbm_to_vmem [thread:$0]  %s1589_s1, 8192, %s34_s10, [#allocation6], %s1473_s12, %s1473_s12, %s1474_s13  }
   0xf   :  { %s1475_s16 = smov [#allocation2]   ;;  %s1476_s18 = smov [#allocation7]  }
  0x10   :  { %s24_s17 = sshll.u32 %s1475_s16, 4  ;;  %s49_s19 = sshll.u32 %s1476_s18, 4  ;;  %s25_s17 = int_to_ptr.vmem [resolvable:$true] %s24_s17  ;;  %s50_s19 = int_to_ptr.vmem [resolvable:$true] %s49_s19 }
  0x11   :  { %s1392_s20 = scalar_lea.vmem %s25_s17, 1024  ;;  %p1397_p6 = scmp.lt.s32.totalorder %s25_s17, %s25_s17 }
  0x12   :  { %p1393_p5 = scmp.ne.s32.totalorder %s25_s17, %s1392_s20  ;;  %p1398_p7 = scmp.lt.s32.totalorder %s1392_s20, %s1392_s20 }
  0x14   :  { %p1399_p8 = por %p1398_p7, %p1397_p6 }
  0x16   :  { %p1400_p9 = pnand %p1399_p8, %p1393_p5 }
  0x18   :  { %1403 = shalt.err (!%p1400_p9)
}
  0x19   :  { %27 = dma.hbm_to_vmem [thread:$0]  %s1588_s0, 1024, %s25_s17, [#allocation3]  }
  0x1a   :  { %s1412_s23 = scalar_lea.vmem %s50_s19, 1024  ;;  %p1417_p11 = scmp.lt.s32.totalorder %s50_s19, %s50_s19 }
  0x1b   :  { %p1413_p10 = scmp.ne.s32.totalorder %s50_s19, %s1412_s23  ;;  %p1418_p12 = scmp.lt.s32.totalorder %s1412_s23, %s1412_s23 }
  0x1d   :  { %p1419_p13 = por %p1418_p12, %p1417_p11 }
  0x1f   :  { %p1420_p0 = pnand %p1419_p13, %p1413_p10 }
  0x21   :  { %1423 = shalt.err (!%p1420_p0)
}
  0x22   :  { %55 = dma.hbm_to_vmem [thread:$0]  %s1592_s4, 1024, %s50_s19, [#allocation6], %s1473_s12, %s1473_s12, %s1474_s13  }
  0x23   :  { %s1477_s25 = smov [#allocation8]  }
  0x24   :  { %s65_s26 = sshll.u32 %s1477_s25, 4  ;;  %s66_s26 = int_to_ptr.vmem [resolvable:$true] %s65_s26 }
  0x25   :  { %s1432_s27 = scalar_lea.vmem %s66_s26, 1024  ;;  %p1437_p2 = scmp.lt.s32.totalorder %s66_s26, %s66_s26 }
  0x26   :  { %p1433_p1 = scmp.ne.s32.totalorder %s66_s26, %s1432_s27  ;;  %p1438_p3 = scmp.lt.s32.totalorder %s1432_s27, %s1432_s27 }
  0x28   :  { %p1439_p4 = por %p1438_p3, %p1437_p2 }
  0x2a   :  { %p1440_p5 = pnand %p1439_p4, %p1433_p1 }
  0x2c   :  { %1443 = shalt.err (!%p1440_p5)
}
  0x2d   :  { %71 = dma.hbm_to_vmem [thread:$0]  %s1595_s7, 1024, %s66_s26, [#allocation9], %s1473_s12, %s1473_s12, %s1474_s13  }
  0x2e   :  { %1464 = dma.done.wait [#allocation3], 1024  }
  0x2f   :  { %1465 = vsyncadd [#allocation3], 4294966272 }
  0x30   :  { %1466 = dma.done.wait [#allocation6], 9216  }
  0x31   :  { %1467 = vsyncadd [#allocation6], 4294958080 }
  0x32   :  { %1468 = dma.done.wait [#allocation9], 1024  }
  0x33   :  { %1469 = vsyncadd [#allocation9], 4294966272  ;;  %v1284_v0 = vld [vmem:[#allocation5 + $0x78] sm:$0xff]   ;;  %v1288_v4 = vld [vmem:[#allocation5 + $0x70] sm:$0xff]   ;;  %vm1479_vm0 = vmmov 0   ;;  %s1480_s14 = smov [#allocation10]  }
  0x34   :  { %v1285_v1 = vld [vmem:[#allocation5 + $0xf8] sm:$0xff]   ;;  %1129 = vmatprep.subr.bf16.mxu0 %v1284_v0  ;;  %v1289_v5 = vld [vmem:[#allocation5 + $0xf0] sm:$0xff]   ;;  %v1292_v8 = vld [vmem:[#allocation5 + $0x68] sm:$0xff]   ;;  %s1033_s15 = sshll.u32 %s1480_s14, 4  ;;  %s1034_s15 = int_to_ptr.vmem [resolvable:$true] %s1033_s15 }
  0x35   :  { %v1286_v2 = vld [vmem:[#allocation5 + $0x38] sm:$0xff]   ;;  %1151 = vmatprep.subr.bf16.mxu1 %v1285_v1  ;;  %v1290_v6 = vld [vmem:[#allocation5 + $0x30] sm:$0xff]   ;;  %v1293_v9 = vld [vmem:[#allocation5 + $0xe8] sm:$0xff]   ;;  %p1449_p7 = scmp.lt.s32.totalorder %s1034_s15, %s1034_s15 }
  0x36   :  { %v1287_v3 = vld [vmem:[#allocation5 + $0xb8] sm:$0xff]   ;;  %1130 = vmatpush3.bf16.msra.mxu0 %v1286_v2  ;;  %v1291_v7 = vld [vmem:[#allocation5 + $0xb0] sm:$0xff]   ;;  %v1294_v10 = vld [vmem:[#allocation5 + $0x28] sm:$0xff]  }
  0x37   :  { %1152 = vmatpush3.bf16.msra.mxu1 %v1287_v3  ;;  %1131 = vmatprep.subr.bf16.mxu0 %v1288_v4  ;;  %v1295_v11 = vld [vmem:[#allocation5 + $0xa8] sm:$0xff]   ;;  %v1296_v12 = vld [vmem:[#allocation5 + $0x60] sm:$0xff]   ;;  %v1300_v16 = vld [vmem:[#allocation5 + $0x58] sm:$0xff]  }
  0x38   :  { %1153 = vmatprep.subr.bf16.mxu1 %v1289_v5  ;;  %v1297_v13 = vld [vmem:[#allocation5 + $0xe0] sm:$0xff]   ;;  %v1301_v17 = vld [vmem:[#allocation5 + $0xd8] sm:$0xff]   ;;  %v1304_v20 = vld [vmem:[#allocation5 + $0x50] sm:$0xff]  }
  0x39   :  { %v1298_v14 = vld [vmem:[#allocation5 + $0x20] sm:$0xff]   ;;  %v1302_v18 = vld [vmem:[#allocation5 + $0x18] sm:$0xff]   ;;  %v1305_v21 = vld [vmem:[#allocation5 + $0xd0] sm:$0xff]  }
  0x3a   :  { %1132 = vmatpush3.bf16.msra.mxu0 %v1290_v6  ;;  %v1299_v15 = vld [vmem:[#allocation5 + $0xa0] sm:$0xff]   ;;  %v1303_v19 = vld [vmem:[#allocation5 + $0x98] sm:$0xff]   ;;  %v1306_v22 = vld [vmem:[#allocation5 + $0x10] sm:$0xff]  }
  0x3b   :  { %1154 = vmatpush3.bf16.msra.mxu1 %v1291_v7  ;;  %1133 = vmatprep.subr.bf16.mxu0 %v1292_v8  ;;  %v1307_v23 = vld [vmem:[#allocation5 + $0x90] sm:$0xff]   ;;  %v1308_v24 = vld [vmem:[#allocation5 + $0x48] sm:$0xff]   ;;  %v1312_v28 = vld [vmem:[#allocation5 + $0x40] sm:$0xff]  }
  0x3c   :  { %1155 = vmatprep.subr.bf16.mxu1 %v1293_v9  ;;  %v1309_v25 = vld [vmem:[#allocation5 + $0xc8] sm:$0xff]   ;;  %v1313_v29 = vld [vmem:[#allocation5 + $0xc0] sm:$0xff]   ;;  %v90_v33 = vld [vmem:[#allocation2 + $0x18] sm:$0xff] }
  0x3d   :  { %v1310_v26 = vld [vmem:[#allocation5 + $0x8] sm:$0xff]   ;;  %v1314_v30 = vld [vmem:[#allocation5] sm:$0xff]   ;;  %v98_v36 = vpack.c.bf16 %v90_v33, %v90_v33  ;;  %v89_v38 = vld [vmem:[#allocation2 + $0x10] sm:$0xff] }
  0x3e   :  { %1134 = vmatpush3.bf16.msra.mxu0 %v1294_v10  ;;  %v1311_v27 = vld [vmem:[#allocation5 + $0x88] sm:$0xff]   ;;  %v1315_v31 = vld [vmem:[#allocation5 + $0x80] sm:$0xff]   ;;  %v97_v39 = vpack.c.bf16 %v89_v38, %v89_v38  ;;  %v1316_v40 = vld [vmem:[#allocation5 + $0x178] sm:$0xff]  }
  0x3f   :  { %1156 = vmatpush3.bf16.msra.mxu1 %v1295_v11  ;;  %1135 = vmatprep.subr.bf16.mxu0 %v1296_v12  ;;  %v88_v32 = vld [vmem:[#allocation2 + $0x8] sm:$0xff]  ;;  %v87_v34 = vld [vmem:[#allocation2] sm:$0xff]  ;;  %v1317_v41 = vld [vmem:[#allocation5 + $0x1f8] sm:$0xff]  }
  0x40   :  { %1157 = vmatprep.subr.bf16.mxu1 %v1297_v13  ;;  %v96_v35 = vpack.c.bf16 %v88_v32, %v88_v32  ;;  %v95_v37 = vpack.c.bf16 %v87_v34, %v87_v34  ;;  %687 = vmatprep.mubr.bf16.mxu1 %v98_v36  ;;  %v1318_v42 = vld [vmem:[#allocation5 + $0x138] sm:$0xff]   ;;  %v1320_v44 = vld [vmem:[#allocation5 + $0x170] sm:$0xff]   ;;  %v1324_v48 = vld [vmem:[#allocation5 + $0x168] sm:$0xff]  }
  0x41   :  { %v1319_v43 = vld [vmem:[#allocation5 + $0x1b8] sm:$0xff]   ;;  %v1321_v45 = vld [vmem:[#allocation5 + $0x1f0] sm:$0xff]   ;;  %v1325_v49 = vld [vmem:[#allocation5 + $0x1e8] sm:$0xff]  }
  0x42   :  { %1136 = vmatpush3.bf16.msra.mxu0 %v1298_v14  ;;  %647 = vmatprep.mubr.bf16.mxu0 %v96_v35  ;;  %v1322_v46 = vld [vmem:[#allocation5 + $0x130] sm:$0xff]   ;;  %v1326_v50 = vld [vmem:[#allocation5 + $0x128] sm:$0xff]   ;;  %v1328_v52 = vld [vmem:[#allocation5 + $0x160] sm:$0xff]  }
  0x43   :  { %1158 = vmatpush3.bf16.msra.mxu1 %v1299_v15  ;;  %1137 = vmatprep.subr.bf16.mxu0 %v1300_v16  ;;  %v1323_v47 = vld [vmem:[#allocation5 + $0x1b0] sm:$0xff]   ;;  %v1327_v51 = vld [vmem:[#allocation5 + $0x1a8] sm:$0xff]   ;;  %v1329_v53 = vld [vmem:[#allocation5 + $0x1e0] sm:$0xff]  }
  0x44   :  { %1159 = vmatprep.subr.bf16.mxu1 %v1301_v17  ;;  %v1330_v54 = vld [vmem:[#allocation5 + $0x120] sm:$0xff]   ;;  %v1332_v56 = vld [vmem:[#allocation5 + $0x158] sm:$0xff]   ;;  %v1336_v60 = vld [vmem:[#allocation5 + $0x150] sm:$0xff]   ;;  %v1478_v17 = vmov 0.0  }
  0x45   :  { %v1331_v55 = vld [vmem:[#allocation5 + $0x1a0] sm:$0xff]   ;;  %v1333_v57 = vld [vmem:[#allocation5 + $0x1d8] sm:$0xff]   ;;  %v1337_v61 = vld [vmem:[#allocation5 + $0x1d0] sm:$0xff]  }
  0x46   :  { %1138 = vmatpush3.bf16.msra.mxu0 %v1302_v18  ;;  %v1334_v58 = vld [vmem:[#allocation5 + $0x118] sm:$0xff]   ;;  %v1338_v62 = vld [vmem:[#allocation5 + $0x110] sm:$0xff]   ;;  %v1340_v0 = vld [vmem:[#allocation5 + $0x148] sm:$0xff]  }
  0x47   :  { %1160 = vmatpush3.bf16.msra.mxu1 %v1303_v19  ;;  %1139 = vmatprep.subr.bf16.mxu0 %v1304_v20  ;;  %v1335_v59 = vld [vmem:[#allocation5 + $0x198] sm:$0xff]   ;;  %v1339_v63 = vld [vmem:[#allocation5 + $0x190] sm:$0xff]   ;;  %v1341_v1 = vld [vmem:[#allocation5 + $0x1c8] sm:$0xff]  }
  0x48   :  { %1161 = vmatprep.subr.bf16.mxu1 %v1305_v21  ;;  %v1342_v2 = vld [vmem:[#allocation5 + $0x108] sm:$0xff]   ;;  %v1344_v4 = vld [vmem:[#allocation5 + $0x140] sm:$0xff]   ;;  %v94_v9 = vld [vmem:[#allocation2 + $0x38] sm:$0xff] }
  0x49   :  { %v1343_v3 = vld [vmem:[#allocation5 + $0x188] sm:$0xff]   ;;  %v1345_v5 = vld [vmem:[#allocation5 + $0x1c0] sm:$0xff]   ;;  %v102_v11 = vpack.c.bf16 %v94_v9, %v94_v9  ;;  %v93_v13 = vld [vmem:[#allocation2 + $0x30] sm:$0xff] }
  0x4a   :  { %1140 = vmatpush3.bf16.msra.mxu0 %v1306_v22  ;;  %v1346_v6 = vld [vmem:[#allocation5 + $0x100] sm:$0xff]   ;;  %v92_v8 = vld [vmem:[#allocation2 + $0x28] sm:$0xff]  ;;  %v101_v15 = vpack.c.bf16 %v93_v13, %v93_v13  ;;  %v1348_v16 = vld [vmem:[#allocation7 + $0x38] sm:$0xff]  }
  0x4b   :  { %1162 = vmatpush3.bf16.msra.mxu1 %v1307_v23  ;;  %1141 = vmatprep.subr.bf16.mxu0 %v1308_v24  ;;  %v1347_v7 = vld [vmem:[#allocation5 + $0x180] sm:$0xff]   ;;  %v100_v10 = vpack.c.bf16 %v92_v8, %v92_v8  ;;  %v1349_v18 = vld [vmem:[#allocation7 + $0x30] sm:$0xff]   ;;  %v1350_v19 = vld [vmem:[#allocation7 + $0x28] sm:$0xff]  }
  0x4c   :  { %1163 = vmatprep.subr.bf16.mxu1 %v1309_v25  ;;  %v91_v12 = vld [vmem:[#allocation2 + $0x20] sm:$0xff]  ;;  %v1352_v21 = vld [vmem:[#allocation7 + $0x18] sm:$0xff]   ;;  %v1353_v22 = vld [vmem:[#allocation7 + $0x10] sm:$0xff]  }
  0x4d   :  { %v99_v14 = vpack.c.bf16 %v91_v12, %v91_v12  ;;  %v1351_v20 = vld [vmem:[#allocation7 + $0x20] sm:$0xff]   ;;  %v1354_v23 = vld [vmem:[#allocation7 + $0x8] sm:$0xff]   ;;  %v1356_v25 = vld [vmem:[#allocation8 + $0x38] sm:$0xff]  }
  0x4e   :  { %1142 = vmatpush3.bf16.msra.mxu0 %v1310_v26  ;;  %v1355_v24 = vld [vmem:[#allocation7] sm:$0xff]   ;;  %v1357_v26 = vld [vmem:[#allocation8 + $0x30] sm:$0xff]  }
  0x4f   :  { %1164 = vmatpush3.bf16.msra.mxu1 %v1311_v27  ;;  %1143 = vmatprep.subr.bf16.mxu0 %v1312_v28  ;;  %v1358_v27 = vld [vmem:[#allocation8 + $0x28] sm:$0xff]   ;;  %v1359_v28 = vld [vmem:[#allocation8 + $0x20] sm:$0xff]  }
  0x50   :  { %1165 = vmatprep.subr.bf16.mxu1 %v1313_v29  ;;  %v1360_v29 = vld [vmem:[#allocation8 + $0x18] sm:$0xff]   ;;  %v1120_v8 = vld [vmem:[%s1596_s8] ss:$0 sm:$0xff] }
  0x52   :  { %1144 = vmatpush3.bf16.msra.mxu0 %v1314_v30  ;;  %v1361_v30 = vld [vmem:[#allocation8 + $0x10] sm:$0xff]  }
  0x53   :  { %1166 = vmatpush3.bf16.msra.mxu1 %v1315_v31  ;;  %1173 = vmatprep.subr.bf16.mxu0 %v1316_v40 }
  0x54   :  { %1195 = vmatprep.subr.bf16.mxu1 %v1317_v41 }
  0x55   :  { %648 = vmatmul.mubr.bf16.vlgmr.msra.gmra.mxu0 %v95_v37 }
  0x56   :  { %688 = vmatmul.mubr.bf16.vlgmr.msra.gmra.mxu1 %v97_v39  ;;  %1174 = vmatpush3.bf16.msra.mxu0 %v1318_v42 }
  0x57   :  { %1196 = vmatpush3.bf16.msra.mxu1 %v1319_v43  ;;  %1175 = vmatprep.subr.bf16.mxu0 %v1320_v44 }
  0x58   :  { %1197 = vmatprep.subr.bf16.mxu1 %v1321_v45  ;;  %727 = vmatprep.mubr.bf16.mxu0 %v100_v10 }
  0x59   :  { %767 = vmatprep.mubr.bf16.mxu1 %v102_v11 }
  0x5a   :  { %1176 = vmatpush3.bf16.msra.mxu0 %v1322_v46 }
  0x5b   :  { %1198 = vmatpush3.bf16.msra.mxu1 %v1323_v47  ;;  %1177 = vmatprep.subr.bf16.mxu0 %v1324_v48 }
  0x5c   :  { %1199 = vmatprep.subr.bf16.mxu1 %v1325_v49 }
  0x5e   :  { %1178 = vmatpush3.bf16.msra.mxu0 %v1326_v50 }
  0x5f   :  { %1200 = vmatpush3.bf16.msra.mxu1 %v1327_v51  ;;  %1179 = vmatprep.subr.bf16.mxu0 %v1328_v52  ;;  %v1108_v51 = vld [vmem:[%s1590_s2] ss:$0 sm:$0xff] }
  0x60   :  { %1201 = vmatprep.subr.bf16.mxu1 %v1329_v53 }
  0x62   :  { %1180 = vmatpush3.bf16.msra.mxu0 %v1330_v54 }
  0x63   :  { %1202 = vmatpush3.bf16.msra.mxu1 %v1331_v55  ;;  %1181 = vmatprep.subr.bf16.mxu0 %v1332_v56  ;;  %v1109_v55 = vld [vmem:[%s1591_s3] ss:$0 sm:$0xff] }
  0x64   :  { %1203 = vmatprep.subr.bf16.mxu1 %v1333_v57 }
  0x66   :  { %1182 = vmatpush3.bf16.msra.mxu0 %v1334_v58 }
  0x67   :  { %1204 = vmatpush3.bf16.msra.mxu1 %v1335_v59  ;;  %1183 = vmatprep.subr.bf16.mxu0 %v1336_v60  ;;  %v1362_v60 = vld [vmem:[#allocation8 + $0x8] sm:$0xff]  }
  0x68   :  { %1205 = vmatprep.subr.bf16.mxu1 %v1337_v61  ;;  %v1363_v61 = vld [vmem:[#allocation8] sm:$0xff]  }
  0x6a   :  { %1184 = vmatpush3.bf16.msra.mxu0 %v1338_v62  ;;  %v1118_v62 = vld [vmem:[%s1593_s5] ss:$0 sm:$0xff]  ;;  %s1444_s5 = scalar_lea.vmem %s1034_s15, 128 }
  0x6b   :  { %1206 = vmatpush3.bf16.msra.mxu1 %v1339_v63  ;;  %1185 = vmatprep.subr.bf16.mxu0 %v1340_v0  ;;  %v1119_v0 = vld [vmem:[%s1594_s6] ss:$0 sm:$0xff]  ;;  %p1445_p6 = scmp.ne.s32.totalorder %s1034_s15, %s1444_s5  ;;  %p1450_p8 = scmp.lt.s32.totalorder %s1444_s5, %s1444_s5 }
  0x6c   :  { %1207 = vmatprep.subr.bf16.mxu1 %v1341_v1 }
  0x6d   :  { %p1451_p9 = por %p1450_p8, %p1449_p7 }
  0x6e   :  { %1186 = vmatpush3.bf16.msra.mxu0 %v1342_v2 }
  0x6f   :  { %1208 = vmatpush3.bf16.msra.mxu1 %v1343_v3  ;;  %1187 = vmatprep.subr.bf16.mxu0 %v1344_v4  ;;  %p1452_p10 = pnand %p1451_p9, %p1445_p6 }
  0x70   :  { %1209 = vmatprep.subr.bf16.mxu1 %v1345_v5 }
  0x72   :  { %1188 = vmatpush3.bf16.msra.mxu0 %v1346_v6 }
  0x73   :  { %1210 = vmatpush3.bf16.msra.mxu1 %v1347_v7  ;;  %1235 = vmatprep.subr.bf16.mxu0 %v1478_v17 }
  0x74   :  { %1255 = vmatprep.subr.bf16.mxu1 %v1478_v17 }
  0x75   :  { %728 = vmatmul.mubr.bf16.vlgmr.msra.gmra.mxu0 %v99_v14 }
  0x76   :  { %768 = vmatmul.mubr.bf16.vlgmr.msra.gmra.mxu1 %v101_v15  ;;  %1236 = vmatpush3.bf16.msra.mxu0 %v1348_v16 }
  0x77   :  { %1237 = vmatprep.subr.bf16.mxu0 %v1478_v17  ;;  %1251 = vmatprep.mubr.msk.bf16.mxu0 %vm1479_vm0, %v1478_v17 }
  0x78   :  { %1271 = vmatprep.mubr.msk.bf16.mxu1 %vm1479_vm0, %v1478_v17  ;;  %1256 = vmatpush3.bf16.msra.mxu1 %v1356_v25 }
  0x79   :  { %1257 = vmatprep.subr.bf16.mxu1 %v1478_v17 }
  0x7a   :  { %1238 = vmatpush3.bf16.msra.mxu0 %v1349_v18 }
  0x7b   :  { %1239 = vmatprep.subr.bf16.mxu0 %v1478_v17 }
  0x7c   :  { %1258 = vmatpush3.bf16.msra.mxu1 %v1357_v26 }
  0x7d   :  { %1259 = vmatprep.subr.bf16.mxu1 %v1478_v17 }
  0x7e   :  { %1240 = vmatpush3.bf16.msra.mxu0 %v1350_v19 }
  0x7f   :  { %1241 = vmatprep.subr.bf16.mxu0 %v1478_v17 }
  0x80   :  { %1260 = vmatpush3.bf16.msra.mxu1 %v1358_v27 }
  0x81   :  { %1261 = vmatprep.subr.bf16.mxu1 %v1478_v17 }
  0x82   :  { %1242 = vmatpush3.bf16.msra.mxu0 %v1351_v20 }
  0x83   :  { %1243 = vmatprep.subr.bf16.mxu0 %v1478_v17 }
  0x84   :  { %1262 = vmatpush3.bf16.msra.mxu1 %v1359_v28 }
  0x85   :  { %1263 = vmatprep.subr.bf16.mxu1 %v1478_v17 }
  0x86   :  { %1244 = vmatpush3.bf16.msra.mxu0 %v1352_v21 }
  0x87   :  { %1245 = vmatprep.subr.bf16.mxu0 %v1478_v17 }
  0x88   :  { %1264 = vmatpush3.bf16.msra.mxu1 %v1360_v29 }
  0x89   :  { %1265 = vmatprep.subr.bf16.mxu1 %v1478_v17 }
  0x8a   :  { %1246 = vmatpush3.bf16.msra.mxu0 %v1353_v22 }
  0x8b   :  { %1247 = vmatprep.subr.bf16.mxu0 %v1478_v17 }
  0x8c   :  { %1266 = vmatpush3.bf16.msra.mxu1 %v1361_v30 }
  0x8d   :  { %1267 = vmatprep.subr.bf16.mxu1 %v1478_v17 }
  0x8e   :  { %1248 = vmatpush3.bf16.msra.mxu0 %v1354_v23 }
  0x8f   :  { %1249 = vmatprep.subr.bf16.mxu0 %v1478_v17 }
  0x90   :  { %1268 = vmatpush3.bf16.msra.mxu1 %v1362_v60 }
  0x91   :  { %1269 = vmatprep.subr.bf16.mxu1 %v1478_v17 }
  0x92   :  { %1250 = vmatpush3.bf16.msra.mxu0 %v1355_v24 }
  0x94   :  { %1270 = vmatpush3.bf16.msra.mxu1 %v1363_v61 }
 0x115   :  { %v1145_v31 = vpop.f32.mrf.mxu0 }
 0x116   :  { %v1167_v32 = vpop.f32.mrf.mxu1 }
 0x117   :  { %v1146_v33 = vpop.f32.mrf.mxu0 }
 0x118   :  { %v1168_v34 = vpop.f32.mrf.mxu1  ;;  %v1147_v39 = vadd.f32 %v1146_v33, %v1145_v31 }
 0x119   :  { %v1148_v35 = vpop.f32.mrf.mxu0  ;;  %v1169_v40 = vadd.f32 %v1168_v34, %v1167_v32 }
 0x11a   :  { %v1170_v36 = vpop.f32.mrf.mxu1 }
 0x11b   :  { %v1149_v37 = vpop.f32.mrf.mxu0  ;;  %v690_v44 = vadd.f32 %v1169_v40, %v1147_v39 }
 0x11c   :  { %v1171_v38 = vpop.f32.mrf.mxu1 }
 0x135   :  { %v1189_v41 = vpop.f32.mrf.mxu0 }
 0x136   :  { %v1211_v42 = vpop.f32.mrf.mxu1 }
 0x137   :  { %v1190_v43 = vpop.f32.mrf.mxu0 }
 0x138   :  { %v1191_v45 = vadd.f32 %v1190_v43, %v1189_v41  ;;  %v1212_v46 = vpop.f32.mrf.mxu1 }
 0x139   :  { %v1192_v47 = vpop.f32.mrf.mxu0  ;;  %v1213_v49 = vadd.f32 %v1212_v46, %v1211_v42 }
 0x13a   :  { %v730_v48 = vadd.f32 %v1191_v45, %v690_v44  ;;  %v1214_v50 = vpop.f32.mrf.mxu1 }
 0x13b   :  { %v1193_v52 = vpop.f32.mrf.mxu0 }
 0x13c   :  { %v770_v53 = vadd.f32 %v1213_v49, %v730_v48  ;;  %v1215_v54 = vpop.f32.mrf.mxu1 }
 0x13e   :  { %v782_v56 = vmul.f32 %v1108_v51, %v770_v53 }
 0x140   :  { %v790_v57 = vadd.f32 %v1109_v55, %v782_v56 }
 0x142   :  { %v791_v58 = vmax.f32 %v790_v57, 0.0 }
 0x144   :  { %v792_v59 = vpack.c.bf16 %v791_v58, %v791_v58 }
 0x146   :  { %1252 = vmatmul.mubr.bf16.vlgmr.msra.gmra.mxu0 %v792_v59 }
 0x206   :  { %v891_v63 = vpop.f32.mrf.mxu0 }
 0x207   :  { %v904_v1 = vmul.f32 %v1118_v62, %v891_v63 }
 0x208   :  { %v1253_v2 = vpop.f32.mrf.mxu0 }
 0x209   :  { %v912_v3 = vadd.f32 %v1119_v0, %v904_v1 }
 0x20a   :  { %v894_v4 = vpop.f32.mrf.mxu0 }
 0x20b   :  { %v913_v5 = vmax.f32 %v912_v3, 0.0 }
 0x20c   :  { %v1254_v6 = vpop.f32.mrf.mxu0 }
 0x20d   :  { %v914_v7 = vpack.c.bf16 %v913_v5, %v913_v5 }
 0x20f   :  { %1272 = vmatmul.mubr.bf16.vlgmr.msra.gmra.mxu1 %v914_v7 }
 0x2cf   :  { %v1020_v9 = vpop.f32.mrf.mxu1 }
 0x2d0   :  { %v1021_v10 = vadd.f32 %v1120_v8, %v1020_v9 }
 0x2d1   :  { %v1273_v11 = vpop.f32.mrf.mxu1 }
 0x2d2   :  { %1026 = vst [vmem:[#allocation10] sm:$0xff] %v1021_v10 }
 0x2d3   :  { %v1023_v12 = vpop.f32.mrf.mxu1 }
 0x2d4   :  { %1455 = shalt.err (!%p1452_p10)
}
 0x2d5   :  { %1036 = dma.vmem_to_hbm [thread:$0]  %s1034_s15, 128, %s1597_s9, [#allocation4]   ;;  %v1274_v13 = vpop.f32.mrf.mxu1 }
 0x2d6   :  { %1470 = dma.done.wait [#allocation4], 128  }
 0x2d7   :  { %1471 = vsyncadd [#allocation4], 4294967168 }
 0x2d8   :  { %1040 = vsyncpa [#allocation3], 1 }
 0x2d9   :  { %1041 = vsyncpa [#allocation6], 1 }
 0x2da   :  { %1042 = vsyncpa [#allocation9], 1 }
 0x2db   :  { %1043 = vsyncpa [#allocation4], 1 }

</bundles_post_ra>
